<compile_context>
chip_gen: v7x
topology: tpu7x:2x2x1
jax: 0.10.0
libtpu: 0.0.40
codegen_flags: <defaults>
</compile_context>

<pallas_src>
import functools

import jax
import jax.numpy as jnp
from jax import lax
from jax.experimental import pallas as pl
from jax.experimental.pallas import tpu as pltpu

EPS = 1e-6       # F.pairwise_distance default eps
MARGIN = 2.0     # ContrastiveLoss default margin


def _round_up(x, m):
    return ((x + m - 1) // m) * m


def _tpu_defaults():
    """Per-chip (pipeline VMEM budget bytes, vmem_limit_bytes, num_cores)."""
    try:
        kind = jax.devices()[0].device_kind.lower()
    except Exception:
        kind = ""
    if "v5 lite" in kind or "v5lite" in kind or "v5e" in kind:
        return 12 << 20, None, 1          # stay inside the 16 MiB scoped default
    if "v6" in kind or "trillium" in kind:
        return 40 << 20, 64 << 20, 1      # 128 MiB physical VMEM, ample headroom
    if "v7" in kind:
        return 36 << 20, 48 << 20, 2      # 64 MiB physical per TC, 2 TCs (megacore)
    return 24 << 20, 32 << 20, 1          # unknown chip: conservative


def _contrastive_kernel(x1_ref, x2_ref, lab_ref, o_ref, d2_ref, acc_ref, *,
                        margin, eps, n_rows, n_cols, nb_per_core):
    c = pl.program_id(0)          # batch shard (parallel -> megacore on v7x)
    i = pl.program_id(1)          # row-block axis (arbitrary)
    j = pl.program_id(2)          # feature-block reduction axis (arbitrary)
    nd = pl.num_programs(2)
    tb, td = x1_ref.shape

    @pl.when((i == 0) & (j == 0))
    def _():
        acc_ref[...] = jnp.zeros_like(acc_ref)

    @pl.when(j == 0)
    def _():
        d2_ref[...] = jnp.zeros_like(d2_ref)

    x1 = x1_ref[...].astype(jnp.float32)
    x2 = x2_ref[...].astype(jnp.float32)
    diff = x1 - x2 + eps                                   # pairwise_distance eps
    # Zero the ragged feature tail of the final D block (select, not multiply,
    # so garbage / NaN beyond the array never propagates).
    col_ids = j * td + lax.broadcasted_iota(jnp.int32, (tb, td), 1)
    diff = jnp.where(col_ids < n_cols, diff, 0.0)
    d2_ref[...] += jnp.sum(diff * diff, axis=-1, keepdims=True)   # (tb, 1)

    block_idx = c * nb_per_core + i

    # Skip the accumulate entirely for overflow blocks (batch already consumed);
    # the row mask below handles the ragged tail of the final real block.
    @pl.when((j == nd - 1) & (block_idx * tb < n_rows))
    def _():
        d2 = d2_ref[...]
        d = jnp.sqrt(d2)
        lab = lab_ref[...].astype(jnp.float32)             # (tb, 1)
        hinge = jnp.maximum(margin - d, 0.0)
        row_loss = lab * d2 + (1.0 - lab) * hinge * hinge  # (tb, 1)
        row_ids = block_idx * tb + lax.broadcasted_iota(jnp.int32, (tb, 1), 0)
        acc_ref[...] += jnp.where(row_ids < n_rows, row_loss, 0.0)

    @pl.when((i == pl.num_programs(1) - 1) & (j == nd - 1))
    def _():
        # Single cross-sublane reduce + one aligned (8,128) store per core.
        s = jnp.sum(acc_ref[...], axis=0, keepdims=True)    # (1, 1)
        o_ref[...] = jnp.broadcast_to(s, o_ref.shape)


def contrastive_loss(output1, output2, label, margin=MARGIN, eps=EPS, *,
                     tb=None, num_cores=None, vmem_budget=None):
    assert output1.shape == output2.shape and output1.ndim == 2
    B, D = output1.shape
    itemsize = jnp.dtype(output1.dtype).itemsize

    auto_budget, vmem_limit, auto_cores = _tpu_defaults()
    if vmem_budget is None:
        vmem_budget = auto_budget
    if num_cores is None:
        num_cores = auto_cores

    Dp = _round_up(D, 128)        # lane-padded feature width = real VMEM cost

    # VMEM bytes one batch row costs across the whole pipeline:
    #   2 inputs x 2 pipeline buffers + ~3 f32 temporaries (upcasts / diff)
    #   + generous allowance for the lane-padded (tb,1) labels / scratch rows.
    def per_row_bytes(d_block):
        return 4 * d_block * itemsize + 3 * d_block * 4 + 8 * 128 * 4

    # D-tiling fallback: shrink the feature block (multiple of 128) until even
    # an 8-row block fits the budget -- keeps the kernel HBM-bound at any D.
    td = Dp
    while td > 128 and 8 * per_row_bytes(td) > vmem_budget:
        td = _round_up(td // 2, 128)

    if td >= Dp:
        td_block, d_grid = D, 1           # single feature block (full axis)
        row_cost = per_row_bytes(Dp)
    else:
        td_block, d_grid = td, -(-D // td)
        row_cost = per_row_bytes(td)

    if tb is None:
        tb = vmem_budget // row_cost
        tb = min(tb, _round_up(B, 8))     # don't tile far past the batch
        tb = max(8, (tb // 8) * 8)

    nb_total = -(-B // tb)                # ceil(B / tb)
    nb_per_core = -(-nb_total // num_cores)

    lab2d = jnp.asarray(label, jnp.float32).reshape(B, 1)

    def row_block(c, i):
        # Clamp so overflow steps (nb_total not divisible by num_cores) still
        # read a valid block; their rows are skipped/masked inside the kernel.
        return jnp.minimum(c * nb_per_core + i, nb_total - 1)

    kernel = functools.partial(
        _contrastive_kernel, margin=float(margin), eps=float(eps),
        n_rows=B, n_cols=D, nb_per_core=nb_per_core)

    compiler_kwargs = dict(
        dimension_semantics=("parallel", "arbitrary", "arbitrary"))
    if vmem_limit is not None:
        compiler_kwargs["vmem_limit_bytes"] = int(vmem_limit)

    cost = pl.CostEstimate(
        flops=int(4 * B * D + 8 * B),
        transcendentals=int(B),
        bytes_accessed=int(2 * B * D * itemsize + 4 * B
                           + num_cores * 8 * 128 * 4))

    out = pl.pallas_call(
        kernel,
        out_shape=jax.ShapeDtypeStruct((num_cores * 8, 128), jnp.float32),
        grid_spec=pltpu.PrefetchScalarGridSpec(
            num_scalar_prefetch=0,
            grid=(num_cores, nb_per_core, d_grid),
            in_specs=[
                pl.BlockSpec((tb, td_block), lambda c, i, j: (row_block(c, i), j)),
                pl.BlockSpec((tb, td_block), lambda c, i, j: (row_block(c, i), j)),
                pl.BlockSpec((tb, 1), lambda c, i, j: (row_block(c, i), 0)),
            ],
            out_specs=pl.BlockSpec((8, 128), lambda c, i, j: (c, 0)),
            scratch_shapes=[pltpu.VMEM((tb, 1), jnp.float32),   # d2 accumulator
                            pltpu.VMEM((tb, 1), jnp.float32)],  # loss accumulator
        ),
        compiler_params=pltpu.CompilerParams(**compiler_kwargs),
        cost_estimate=cost,
    )(output1, output2, lab2d)

    per_core = out.reshape(num_cores, 8, 128)[:, 0, 0]   # one scalar per core
    return jnp.sum(per_core) / B


def contrastive_loss_ref(output1, output2, label, margin=MARGIN, eps=EPS):
    d = jnp.sqrt(jnp.sum((output1.astype(jnp.float32)
                          - output2.astype(jnp.float32) + eps) ** 2, axis=-1))
    return jnp.mean(label * d ** 2
                    + (1.0 - label) * jnp.maximum(margin - d, 0.0) ** 2)


if __name__ == "__main__":
    key = jax.random.PRNGKey(0)
    k1, k2, k3 = jax.random.split(key, 3)
    B, D = 8, 32
    output1 = jax.random.normal(k1, (B, D), dtype=jnp.float32)
    output2 = jax.random.normal(k2, (B, D), dtype=jnp.float32)
    label = jax.random.bernoulli(k3, 0.5, (B,)).astype(jnp.float32)

    loss = contrastive_loss(output1, output2, label)
    jax.block_until_ready(loss)
    ref = contrastive_loss_ref(output1, output2, label)
    assert jnp.allclose(loss, ref, rtol=1e-5, atol=1e-5), (loss, ref)

    # Ragged-batch path: no wrapper-side padding, handled by in-kernel masking.
    B2 = 13
    o1 = jax.random.normal(k1, (B2, D), dtype=jnp.float32)
    o2 = jax.random.normal(k2, (B2, D), dtype=jnp.float32)
    lb = jax.random.bernoulli(k3, 0.5, (B2,)).astype(jnp.float32)
    loss2 = contrastive_loss(o1, o2, lb)
    jax.block_until_ready(loss2)
    ref2 = contrastive_loss_ref(o1, o2, lb)
    assert jnp.allclose(loss2, ref2, rtol=1e-5, atol=1e-5), (loss2, ref2)

    print("KERNEL_OK")
</pallas_src>

<mosaic_0001>
module attributes {stable_mosaic.version = 11 : i64} {
  func.func @_contrastive_kernel(%arg0: i32, %arg1: i32, %arg2: i32, %arg3: memref<8x32xf32, #tpu.memory_space<vmem>>, %arg4: memref<8x32xf32, #tpu.memory_space<vmem>>, %arg5: memref<8x1xf32, #tpu.memory_space<vmem>>, %arg6: memref<8x128xf32, #tpu.memory_space<vmem>>, %arg7: memref<8x1xf32, #tpu.memory_space<vmem>>, %arg8: memref<8x1xf32, #tpu.memory_space<vmem>>) attributes {dimension_semantics = [#tpu.dimension_semantics<parallel>, #tpu.dimension_semantics<arbitrary>, #tpu.dimension_semantics<arbitrary>], iteration_bounds = array<i64: 1, 1, 1>, scalar_prefetch = 0 : i64, scratch_operands = 2 : i64, tpu.core_type = #tpu.core_type<tc>, window_params = [{transform_indices = @transform_0, window_bounds = array<i64: 8, 32>}, {transform_indices = @transform_1, window_bounds = array<i64: 8, 32>}, {transform_indices = @transform_2, window_bounds = array<i64: 8, 1>}, {transform_indices = @transform_3, window_bounds = array<i64: 8, 128>}]} {
    %c0_i32 = arith.constant 0 : i32
    %0 = arith.cmpi eq, %arg1, %c0_i32 : i32
    %c0_i32_0 = arith.constant 0 : i32
    %1 = arith.cmpi eq, %arg2, %c0_i32_0 : i32
    %2 = arith.andi %0, %1 : i1
    %3 = arith.extui %2 : i1 to i32
    %c0_i32_1 = arith.constant 0 : i32
    %4 = arith.cmpi ne, %3, %c0_i32_1 : i32
    scf.if %4 {
      %cst_20 = arith.constant 0.000000e+00 : f32
      %40 = vector.broadcast %cst_20 : f32 to vector<8x1xf32>
      %c0_21 = arith.constant 0 : index
      %c0_22 = arith.constant 0 : index
      %41 = vector.load %arg8[%c0_21, %c0_22] : memref<8x1xf32, #tpu.memory_space<vmem>>, vector<8x1xf32>
      tpu.vector_store %arg8[%c0_21, %c0_22], %40 {strides = array<i32>} : memref<8x1xf32, #tpu.memory_space<vmem>>, vector<8x1xf32>,
    } else {
    }
    %c0_i32_2 = arith.constant 0 : i32
    %5 = arith.cmpi eq, %arg2, %c0_i32_2 : i32
    %6 = arith.extui %5 : i1 to i32
    %c0_i32_3 = arith.constant 0 : i32
    %7 = arith.cmpi ne, %6, %c0_i32_3 : i32
    scf.if %7 {
      %cst_20 = arith.constant 0.000000e+00 : f32
      %40 = vector.broadcast %cst_20 : f32 to vector<8x1xf32>
      %c0_21 = arith.constant 0 : index
      %c0_22 = arith.constant 0 : index
      %41 = vector.load %arg7[%c0_21, %c0_22] : memref<8x1xf32, #tpu.memory_space<vmem>>, vector<8x1xf32>
      tpu.vector_store %arg7[%c0_21, %c0_22], %40 {strides = array<i32>} : memref<8x1xf32, #tpu.memory_space<vmem>>, vector<8x1xf32>,
    } else {
    }
    %c0 = arith.constant 0 : index
    %c0_4 = arith.constant 0 : index
    %8 = vector.load %arg3[%c0, %c0_4] : memref<8x32xf32, #tpu.memory_space<vmem>>, vector<8x32xf32>
    %c0_5 = arith.constant 0 : index
    %c0_6 = arith.constant 0 : index
    %9 = vector.load %arg4[%c0_5, %c0_6] : memref<8x32xf32, #tpu.memory_space<vmem>>, vector<8x32xf32>
    %10 = arith.subf %8, %9 : vector<8x32xf32>
    %cst = arith.constant 9.99999997E-7 : f32
    %11 = vector.broadcast %cst : f32 to vector<8x32xf32>
    %12 = arith.addf %10, %11 : vector<8x32xf32>
    %c32_i32 = arith.constant 32 : i32
    %13 = arith.muli %arg2, %c32_i32 : i32
    %14 = tpu.iota {dimensions = array<i32: 1>} : vector<8x32xi32>
    %15 = vector.broadcast %13 : i32 to vector<8x32xi32>
    %16 = arith.addi %15, %14 : vector<8x32xi32>
    %c32_i32_7 = arith.constant 32 : i32
    %17 = vector.broadcast %c32_i32_7 : i32 to vector<8x32xi32>
    %18 = arith.cmpi slt, %16, %17 : vector<8x32xi32>
    %cst_8 = arith.constant 0.000000e+00 : f32
    %19 = vector.broadcast %cst_8 : f32 to vector<8x32xf32>
    %20 = arith.select %18, %12, %19 : vector<8x32xi1>, vector<8x32xf32>
    %c0_9 = arith.constant 0 : index
    %c0_10 = arith.constant 0 : index
    %21 = vector.load %arg7[%c0_9, %c0_10] : memref<8x1xf32, #tpu.memory_space<vmem>>, vector<8x1xf32>
    %22 = arith.mulf %20, %20 : vector<8x32xf32>
    %cst_11 = arith.constant dense<0.000000e+00> : vector<8xf32>
    %23 = vector.multi_reduction <add>, %22, %cst_11 [1] : vector<8x32xf32> to vector<8xf32>
    %24 = vector.shape_cast %23 : vector<8xf32> to vector<8x1xf32>
    %25 = arith.addf %21, %24 : vector<8x1xf32>
    %c0_12 = arith.constant 0 : index
    %c0_13 = arith.constant 0 : index
    %26 = vector.load %arg7[%c0_12, %c0_13] : memref<8x1xf32, #tpu.memory_space<vmem>>, vector<8x1xf32>
    tpu.vector_store %arg7[%c0_12, %c0_13], %25 {strides = array<i32>} : memref<8x1xf32, #tpu.memory_space<vmem>>, vector<8x1xf32>,
    %c1_i32 = arith.constant 1 : i32
    %27 = arith.muli %arg0, %c1_i32 : i32
    %28 = arith.addi %27, %arg1 : i32
    %c0_i32_14 = arith.constant 0 : i32
    %29 = arith.cmpi eq, %arg2, %c0_i32_14 : i32
    %c8_i32 = arith.constant 8 : i32
    %30 = arith.muli %28, %c8_i32 : i32
    %c8_i32_15 = arith.constant 8 : i32
    %31 = arith.cmpi slt, %30, %c8_i32_15 : i32
    %32 = arith.andi %29, %31 : i1
    %33 = arith.extui %32 : i1 to i32
    %c0_i32_16 = arith.constant 0 : i32
    %34 = arith.cmpi ne, %33, %c0_i32_16 : i32
    scf.if %34 {
      %c0_20 = arith.constant 0 : index
      %c0_21 = arith.constant 0 : index
      %40 = vector.load %arg7[%c0_20, %c0_21] : memref<8x1xf32, #tpu.memory_space<vmem>>, vector<8x1xf32>
      %41 = math.sqrt %40 : vector<8x1xf32>
      %c0_22 = arith.constant 0 : index
      %c0_23 = arith.constant 0 : index
      %42 = vector.load %arg5[%c0_22, %c0_23] : memref<8x1xf32, #tpu.memory_space<vmem>>, vector<8x1xf32>
      %cst_24 = arith.constant 2.000000e+00 : f32
      %43 = vector.broadcast %cst_24 : f32 to vector<8x1xf32>
      %44 = arith.subf %43, %41 : vector<8x1xf32>
      %cst_25 = arith.constant 0.000000e+00 : f32
      %45 = vector.broadcast %cst_25 : f32 to vector<8x1xf32>
      %46 = arith.maximumf %44, %45 : vector<8x1xf32>
      %47 = arith.mulf %42, %40 : vector<8x1xf32>
      %cst_26 = arith.constant 1.000000e+00 : f32
      %48 = vector.broadcast %cst_26 : f32 to vector<8x1xf32>
      %49 = arith.subf %48, %42 : vector<8x1xf32>
      %50 = arith.mulf %49, %46 : vector<8x1xf32>
      %51 = arith.mulf %50, %46 : vector<8x1xf32>
      %52 = arith.addf %47, %51 : vector<8x1xf32>
      %c8_i32_27 = arith.constant 8 : i32
      %53 = arith.muli %28, %c8_i32_27 : i32
      %54 = tpu.iota {dimensions = array<i32: 0>} : vector<8x1xi32>
      %55 = vector.broadcast %53 : i32 to vector<8x1xi32>
      %56 = arith.addi %55, %54 : vector<8x1xi32>
      %c0_28 = arith.constant 0 : index
      %c0_29 = arith.constant 0 : index
      %57 = vector.load %arg8[%c0_28, %c0_29] : memref<8x1xf32, #tpu.memory_space<vmem>>, vector<8x1xf32>
      %c8_i32_30 = arith.constant 8 : i32
      %58 = vector.broadcast %c8_i32_30 : i32 to vector<8x1xi32>
      %59 = arith.cmpi slt, %56, %58 : vector<8x1xi32>
      %cst_31 = arith.constant 0.000000e+00 : f32
      %60 = vector.broadcast %cst_31 : f32 to vector<8x1xf32>
      %61 = arith.select %59, %52, %60 : vector<8x1xi1>, vector<8x1xf32>
      %62 = arith.addf %57, %61 : vector<8x1xf32>
      %c0_32 = arith.constant 0 : index
      %c0_33 = arith.constant 0 : index
      %63 = vector.load %arg8[%c0_32, %c0_33] : memref<8x1xf32, #tpu.memory_space<vmem>>, vector<8x1xf32>
      tpu.vector_store %arg8[%c0_32, %c0_33], %62 {strides = array<i32>} : memref<8x1xf32, #tpu.memory_space<vmem>>, vector<8x1xf32>,
    } else {
    }
    %c0_i32_17 = arith.constant 0 : i32
    %35 = arith.cmpi eq, %arg1, %c0_i32_17 : i32
    %c0_i32_18 = arith.constant 0 : i32
    %36 = arith.cmpi eq, %arg2, %c0_i32_18 : i32
    %37 = arith.andi %35, %36 : i1
    %38 = arith.extui %37 : i1 to i32
    %c0_i32_19 = arith.constant 0 : i32
    %39 = arith.cmpi ne, %38, %c0_i32_19 : i32
    scf.if %39 {
      %c0_20 = arith.constant 0 : index
      %c0_21 = arith.constant 0 : index
      %40 = vector.load %arg8[%c0_20, %c0_21] : memref<8x1xf32, #tpu.memory_space<vmem>>, vector<8x1xf32>
      %cst_22 = arith.constant dense<0.000000e+00> : vector<1xf32>
      %41 = vector.multi_reduction <add>, %40, %cst_22 [0] : vector<8x1xf32> to vector<1xf32>
      %42 = vector.shape_cast %41 : vector<1xf32> to vector<1x1xf32>
      %43 = vector.shape_cast %42 : vector<1x1xf32> to vector<1x1xf32>
      %44 = vector.broadcast %43 : vector<1x1xf32> to vector<8x128xf32>
      %c0_23 = arith.constant 0 : index
      %c0_24 = arith.constant 0 : index
      %45 = vector.load %arg6[%c0_23, %c0_24] : memref<8x128xf32, #tpu.memory_space<vmem>>, vector<8x128xf32>
      tpu.vector_store %arg6[%c0_23, %c0_24], %44 {strides = array<i32>} : memref<8x128xf32, #tpu.memory_space<vmem>>, vector<8x128xf32>,
    } else {
    }
    return
  }
  func.func @transform_0(%arg0: i32, %arg1: i32, %arg2: i32) -> (i32, i32) {
    %c1_i32 = arith.constant 1 : i32
    %0 = arith.muli %arg0, %c1_i32 : i32
    %1 = arith.addi %0, %arg1 : i32
    %c0_i32 = arith.constant 0 : i32
    %2 = arith.minsi %1, %c0_i32 : i32
    %c0_i32_0 = arith.constant 0 : i32
    return %2, %arg2 : i32, i32
  }
  func.func @transform_1(%arg0: i32, %arg1: i32, %arg2: i32) -> (i32, i32) {
    %c1_i32 = arith.constant 1 : i32
    %0 = arith.muli %arg0, %c1_i32 : i32
    %1 = arith.addi %0, %arg1 : i32
    %c0_i32 = arith.constant 0 : i32
    %2 = arith.minsi %1, %c0_i32 : i32
    %c0_i32_0 = arith.constant 0 : i32
    return %2, %arg2 : i32, i32
  }
  func.func @transform_2(%arg0: i32, %arg1: i32, %arg2: i32) -> (i32, i32) {
    %c1_i32 = arith.constant 1 : i32
    %0 = arith.muli %arg0, %c1_i32 : i32
    %1 = arith.addi %0, %arg1 : i32
    %c0_i32 = arith.constant 0 : i32
    %2 = arith.minsi %1, %c0_i32 : i32
    %c0_i32_0 = arith.constant 0 : i32
    %c0_i32_1 = arith.constant 0 : i32
    return %2, %c0_i32_0 : i32, i32
  }
  func.func @transform_3(%arg0: i32, %arg1: i32, %arg2: i32) -> (i32, i32) {
    %c0_i32 = arith.constant 0 : i32
    %c0_i32_0 = arith.constant 0 : i32
    return %arg0, %c0_i32 : i32, i32
  }
}

</mosaic_0001>

<bundles_post_ra>
// kernel: tpu_custom_call.1
= control target key start
LH: loop header
LB: loop body
LE: loop exit
PB: predicated region body
PF: predicated region fallthrough
CT: control target
= control target key end

     0   :  { %8 = vsyncpa [#allocation5], 0  ;;  %s313_s0 = inlined_call_operand.vmem [shape: f32[8,32], index: 0, kind: input, shape index: {}]   ;;  %s314_s1 = inlined_call_operand.hbm [shape: f32[8,32], index: 1, kind: input, shape index: {}]   ;;  %s315_s2 = inlined_call_operand.vmem [shape: f32[8,1], index: 2, kind: input, shape index: {}]   ;;  %s316_s3 = inlined_call_operand.hbm [shape: f32[8,128], index: 3, kind: output, shape index: {}]  }
   0x1   :  { %9 = vsyncpa [#allocation6], 0  ;;  %s254_s12 = smov [#allocation4]   ;;  %s206_s16 = scalar_lea.hbm %s314_s1, 128 }
   0x2   :  { %s33_s13 = sshll.u32 %s254_s12, 4  ;;  %p207_p0 = scmp.ne.s32.totalorder %s314_s1, %s206_s16  ;;  %s34_s13 = int_to_ptr.vmem [resolvable:$true] %s33_s13 }
   0x3   :  { %p210_p1 = scmp.lt.u32.totalorder %s206_s16, %s314_s1 }
   0x5   :  { %p212_p2 = pnand %p210_p1, %p207_p0 }
   0x7   :  { %215 = shalt.err (!%p212_p2)
}
   0x8   :  { %s216_s21 = scalar_lea.vmem %s34_s13, 128  ;;  %p221_p4 = scmp.lt.s32.totalorder %s34_s13, %s34_s13 }
   0x9   :  { %p217_p3 = scmp.ne.s32.totalorder %s34_s13, %s216_s21  ;;  %p222_p5 = scmp.lt.s32.totalorder %s216_s21, %s216_s21 }
   0xb   :  { %p223_p6 = por %p222_p5, %p221_p4 }
   0xd   :  { %p224_p7 = pnand %p223_p6, %p217_p3 }
   0xf   :  { %227 = shalt.err (!%p224_p7)
}
  0x10   :  { %36 = dma.hbm_to_vmem [thread:$0]  %s314_s1, 128, %s34_s13, [#allocation5]  }
  0x11   :  { %250 = dma.done.wait [#allocation5], 128  }
  0x12   :  { %251 = vsyncadd [#allocation5], 4294967168  ;;  %vm95_vm0 = vcmask 7168   ;;  %v107_v0 = vlaneseq  ;;  %v255_v1 = vmov 0.0   ;;  %v102_v3 = vld [vmem:[%s313_s0] sm:$0xff]  ;;  %v103_v4 = vld [vmem:[#allocation4] sm:$0xff] }
  0x13   :  { %96 = vst.msk [vmem:[#allocation3] sm:$0xff] %vm95_vm0, %v255_v1  ;;  %101 = vst.msk [vmem:[#allocation2] sm:$0xff] %vm95_vm0, %v255_v1  ;;  %v104_v5 = vsub.f32 %v102_v3, %v103_v4  ;;  %vm115_vm2 = vcmask 261120   ;;  %v256_v10 = vmov 0   ;;  %v137_v19 = vld [vmem:[%s315_s2] sm:$0xff]  ;;  %s257_s2 = smov [#allocation7]  }
  0x14   :  { %v108_v2 = vand.u32 127, %v107_v0  ;;  %203 = vset.pattern.permute.xlu0 %v256_v10  ;;  %v141_v21 = vsub.f32 1.0, %v137_v19  ;;  %s176_s26 = sshll.u32 %s257_s2, 4  ;;  %s177_s26 = int_to_ptr.vmem [resolvable:$true] %s176_s26 }
  0x15   :  { %v105_v6 = vadd.f32 1e-06, %v104_v5  ;;  %s228_s27 = scalar_lea.vmem %s177_s26, 128  ;;  %p233_p9 = scmp.lt.s32.totalorder %s177_s26, %s177_s26 }
  0x16   :  { %vm111_vm1 = vcmp.lt.s32.totalorder %v108_v2, 32  ;;  %p229_p8 = scmp.ne.s32.totalorder %s177_s26, %s228_s27  ;;  %p234_p10 = scmp.lt.s32.totalorder %s228_s27, %s228_s27 }
  0x17   :  { %v112_v7 = vsel %vm111_vm1, %v105_v6, 0.0 }
  0x18   :  { %v114_v8 = vmul.f32 %v112_v7, %v112_v7  ;;  %p235_p11 = por %p234_p10, %p233_p9 }
  0x1a   :  { %v116_v9 = vsel %vm115_vm2, %v114_v8, 0.0  ;;  %v113_v11 = vld [vmem:[#allocation2] sm:$0xff]  ;;  %v149_v27 = vld [vmem:[#allocation3] sm:$0xff]  ;;  %p236_p12 = pnand %p235_p11, %p229_p8 }
  0x1b   :  { %117 = vadd.xlane.f32.xlu0 %v116_v9 }
  0xa8   :  { %v118_v12 = vpop.xlane.xlu0 %117 }
  0xa9   :  { %v119_v13 = vadd.f32 %v118_v12, %v113_v11 }
  0xab   :  { %121 = vst.msk [vmem:[#allocation2] sm:$0xff] %vm95_vm0, %v119_v13 }
  0xb2   :  { %v129_v14 = vld [vmem:[#allocation2] sm:$0xff] }
  0xb3   :  { %204 = vrsqrt.f32 %v129_v14  ;;  %vm132_vm3 = vcmp.eq.f32.partialorder %v129_v14, inf  ;;  %v135_v17 = vand.u32 2147483648, %v129_v14  ;;  %vm134_vm4 = vcmp.eq.f32.partialorder %v129_v14, 0.0 }
  0xb4   :  { %v140_v25 = vmul.f32 %v137_v19, %v129_v14 }
  0xbd   :  { %v205_v15 = vpop.eup %204 }
  0xbe   :  { %v131_v16 = vmul.f32 %v205_v15, %v129_v14 }
  0xc0   :  { %v133_v18 = vsel %vm132_vm3, %v129_v14, %v131_v16 }
  0xc1   :  { %v136_v20 = vsel %vm134_vm4, %v135_v17, %v133_v18 }
  0xc2   :  { %v138_v22 = vsub.f32 2.0, %v136_v20 }
  0xc4   :  { %v139_v23 = vmax.f32 %v138_v22, 0.0 }
  0xc6   :  { %v142_v24 = vmul.f32 %v141_v21, %v139_v23 }
  0xc8   :  { %v143_v26 = vmul.f32 %v142_v24, %v139_v23 }
  0xca   :  { %v144_v28 = vadd.f32 %v143_v26, %v140_v25 }
  0xcc   :  { %v152_v29 = vadd.f32 %v149_v27, %v144_v28 }
  0xce   :  { %153 = vst.msk [vmem:[#allocation3] sm:$0xff] %vm95_vm0, %v152_v29 }
  0xd5   :  { %v156_v30 = vld [vmem:[#allocation3] sm:$0xff] }
  0xd6   :  { %v157_v31 = vsel %vm95_vm0, %v156_v30, 0.0 }
  0xd7   :  { %v158_v32 = vrot.slane %v157_v31, 4 }
  0xd9   :  { %v159_v33 = vadd.f32 %v158_v32, %v157_v31 }
  0xdb   :  { %v160_v34 = vrot.slane %v159_v33, 2 }
  0xdd   :  { %v161_v35 = vadd.f32 %v160_v34, %v159_v33 }
  0xdf   :  { %v162_v36 = vrot.slane %v161_v35, 1 }
  0xe1   :  { %v163_v37 = vadd.f32 %v162_v36, %v161_v35 }
  0xe3   :  { %166 = vperm.xlu0 %203, %v163_v37  }
 0x162   :  { %v167_v38 = vpop.permute.xlu0 %166 }
 0x163   :  { %169 = vst [vmem:[#allocation7] sm:$0xff] %v167_v38 }
 0x164   :  { %239 = shalt.err (!%p236_p12)
}
 0x165   :  { %s240_s30 = scalar_lea.hbm %s316_s3, 128 }
 0x166   :  { %p241_p13 = scmp.ne.s32.totalorder %s316_s3, %s240_s30  ;;  %p244_p0 = scmp.lt.u32.totalorder %s240_s30, %s316_s3 }
 0x168   :  { %p246_p1 = pnand %p244_p0, %p241_p13 }
 0x16a   :  { %249 = shalt.err (!%p246_p1)
}
 0x16b   :  { %179 = dma.vmem_to_hbm [thread:$0]  %s177_s26, 128, %s316_s3, [#allocation6]  }
 0x16c   :  { %252 = dma.done.wait [#allocation6], 128  }
 0x16d   :  { %253 = vsyncadd [#allocation6], 4294967168 }
 0x16e   :  { %183 = vsyncpa [#allocation5], 1 }
 0x16f   :  { %184 = vsyncpa [#allocation6], 1 }

</bundles_post_ra>
